<compile_context>
chip_gen: v7x
topology: tpu7x:2x2x1
jax: 0.10.0
libtpu: 0.0.40
codegen_flags: <defaults>
</compile_context>

<pallas_src>
import math

import jax
import jax.numpy as jnp
from jax.experimental import pallas as pl
from jax.experimental.pallas import tpu as pltpu


def _round_up(x, m):
    return ((x + m - 1) // m) * m


def _classifier_head_kernel(x_ref, w_ref, b_ref, o_ref):
    # x_ref: (tm, H)  w_ref: (H, N_out)  b_ref: (1, N_out)  o_ref: (tm, N_out)
    acc = jnp.dot(x_ref[...], w_ref[...], preferred_element_type=jnp.float32)
    acc = acc + b_ref[...].astype(jnp.float32)
    o_ref[...] = acc.astype(o_ref.dtype)


def prepare_classifier_head_params(w_clf, b_clf, *, pad_lanes=None):
    """One-time (init-time) layout prep, hoisted out of the forward path.

    w_clf: (n_classes, hidden_size)  -- PyTorch nn.Linear weight layout
    b_clf: (n_classes,)
    Returns (w_t, b2, n_classes) with w_t: (H, N_out), b2: (1, N_out) where
    N_out is n_classes padded to a multiple of 128 when that is profitable.
    """
    N, H = w_clf.shape
    w_t = jnp.transpose(w_clf)          # (H, N): classes on the lane axis
    b2 = jnp.reshape(b_clf, (1, N))
    if pad_lanes is None:
        # Lane-dense output is the biggest store-path lever, but only pays
        # off when the padded output traffic stays small next to reading x.
        pad_lanes = (N % 128 != 0) and (H >= 256 or N >= 128)
    if pad_lanes and (N % 128 != 0):
        extra = _round_up(N, 128) - N
        w_t = jnp.pad(w_t, ((0, 0), (0, extra)))
        b2 = jnp.pad(b2, ((0, 0), (0, extra)))
    return w_t, b2, N


def classifier_head_forward(
    x,
    w_t,
    b2,
    n_classes=None,
    *,
    target_tile_bytes=4 << 20,      # aim: ~4 MiB activation tile (HBM roofline)
    vmem_tile_budget=24 << 20,      # fits v7x (64 MiB phys) with headroom
    cast_to_bf16=False,             # halve x HBM traffic when accuracy allows
):
    """
    x:   (..., hidden_size)
    w_t: (hidden_size, N_out)   from prepare_classifier_head_params
    b2:  (1, N_out)
    returns (..., n_classes) in x.dtype
    """
    *lead, H = x.shape
    H_w, N_out = w_t.shape
    assert H == H_w, (H, H_w)
    N = N_out if n_classes is None else n_classes
    M = int(math.prod(lead)) if lead else 1
    out_dtype = x.dtype

    if M == 0:  # zero-sized leading dims: nothing to do
        return jnp.zeros((*lead, N), dtype=out_dtype)

    if cast_to_bf16 and x.dtype == jnp.float32:
        x = x.astype(jnp.bfloat16)

    x2 = x.reshape(M, H)
    x_isz = x2.dtype.itemsize
    o_isz = jnp.dtype(out_dtype).itemsize
    w_bytes = w_t.size * w_t.dtype.itemsize

    # ---- Row-tile selection: as big as the HBM roofline wants, capped so
    # double-buffered x + double-buffered out + resident weight fit the
    # per-generation VMEM budget. Multiple of 8 (sublane constraint).
    avail = max(vmem_tile_budget - 2 * w_bytes, 2 << 20)
    per_row_bytes = 2 * H * x_isz + 2 * N_out * o_isz
    tm = min(avail // per_row_bytes, max(target_tile_bytes // (H * x_isz), 8))
    tm = max((int(tm) // 8) * 8, 8)
    tm = min(tm, _round_up(M, 8))

    grid_m = pl.cdiv(M, tm)            # ragged final block handled by Pallas
    x_tile_bytes = tm * H * x_isz

    # Deeper input pipeline only when per-step DMAs are short enough that
    # double buffering leaves the DMA engine exposed.
    if x_tile_bytes <= (1 << 20) and grid_m >= 4:
        x_spec = pl.BlockSpec((tm, H), lambda i: (i, 0),
                              pipeline_mode=pl.Buffered(3))
        n_xbuf = 3
    else:
        x_spec = pl.BlockSpec((tm, H), lambda i: (i, 0))
        n_xbuf = 2

    est_vmem = (n_xbuf * x_tile_bytes
                + 2 * tm * N_out * o_isz
                + 2 * w_bytes
                + 2 * N_out * 4
                + (1 << 20))
    vmem_limit = int(min(max(2 * est_vmem, 24 << 20), 48 << 20))

    out = pl.pallas_call(
        _classifier_head_kernel,
        out_shape=jax.ShapeDtypeStruct((M, N_out), out_dtype),
        grid_spec=pltpu.PrefetchScalarGridSpec(
            num_scalar_prefetch=0,
            grid=(grid_m,),
            in_specs=[
                x_spec,                                     # activations: streamed
                pl.BlockSpec((H, N_out), lambda i: (0, 0)),  # weight: VMEM-resident
                pl.BlockSpec((1, N_out), lambda i: (0, 0)),  # bias:   VMEM-resident
            ],
            out_specs=pl.BlockSpec((tm, N_out), lambda i: (i, 0)),
        ),
        compiler_params=pltpu.CompilerParams(
            dimension_semantics=("parallel",),
            vmem_limit_bytes=vmem_limit,
        ),
    )(x2, w_t, b2)

    if N_out != N:
        out = out[:, :N]
    return out.reshape(*lead, N)


if __name__ == "__main__":
    key = jax.random.PRNGKey(0)
    B, T, H, n_classes = 2, 8, 32, 8          # small listwise-classifier shapes

    kx, kw, kb = jax.random.split(key, 3)
    x = jax.random.normal(kx, (B, T, H), dtype=jnp.float32)
    w_clf = jax.random.normal(kw, (n_classes, H), dtype=jnp.float32) * 0.1
    b_clf = jax.random.normal(kb, (n_classes,), dtype=jnp.float32) * 0.1

    # Init-time layout prep (done once), then the forward pass.
    w_t, b2, n_cls = prepare_classifier_head_params(w_clf, b_clf)
    y = classifier_head_forward(x, w_t, b2, n_cls)
    y = jax.block_until_ready(y)

    # Pure-JAX reference of ClassifierHead.forward: y = x @ W^T + b
    ref = jnp.einsum("bth,nh->btn", x, w_clf) + b_clf

    assert y.shape == (B, T, n_classes), y.shape
    assert jnp.allclose(y.astype(jnp.float32), ref, rtol=1e-5, atol=1e-5), (
        float(jnp.max(jnp.abs(y.astype(jnp.float32) - ref))))

    print("KERNEL_OK")
</pallas_src>

<mosaic_0001>
module attributes {stable_mosaic.version = 11 : i64} {
  func.func @_classifier_head_kernel(%arg0: i32, %arg1: memref<16x32xf32, #tpu.memory_space<vmem>>, %arg2: memref<32x8xf32, #tpu.memory_space<vmem>>, %arg3: memref<1x8xf32, #tpu.memory_space<vmem>>, %arg4: memref<16x8xf32, #tpu.memory_space<vmem>>) attributes {dimension_semantics = [#tpu.dimension_semantics<parallel>], iteration_bounds = array<i64: 1>, scalar_prefetch = 0 : i64, scratch_operands = 0 : i64, tpu.core_type = #tpu.core_type<tc>, window_params = [{transform_indices = @transform_0, window_bounds = array<i64: 16, 32>}, {pipeline_mode = #tpu.pipeline_mode<synchronous>, transform_indices = @transform_1, window_bounds = array<i64: 32, 8>}, {pipeline_mode = #tpu.pipeline_mode<synchronous>, transform_indices = @transform_2, window_bounds = array<i64: 1, 8>}, {transform_indices = @transform_3, window_bounds = array<i64: 16, 8>}]} {
    %c0 = arith.constant 0 : index
    %c0_0 = arith.constant 0 : index
    %0 = vector.load %arg1[%c0, %c0_0] : memref<16x32xf32, #tpu.memory_space<vmem>>, vector<16x32xf32>
    %c0_1 = arith.constant 0 : index
    %c0_2 = arith.constant 0 : index
    %1 = vector.load %arg2[%c0_1, %c0_2] : memref<32x8xf32, #tpu.memory_space<vmem>>, vector<32x8xf32>
    %cst = arith.constant dense<0.000000e+00> : vector<16x8xf32>
    %2 = tpu.matmul %0, %1, %cst {dimension_numbers = #tpu.dot_dimension_numbers<[1], [0], [0], [1], [0, 0, 1, 1], [], []>} : vector<16x32xf32>, vector<32x8xf32>, vector<16x8xf32> -> vector<16x8xf32>
    %c0_3 = arith.constant 0 : index
    %c0_4 = arith.constant 0 : index
    %3 = vector.load %arg3[%c0_3, %c0_4] : memref<1x8xf32, #tpu.memory_space<vmem>>, vector<1x8xf32>
    %4 = vector.broadcast %3 : vector<1x8xf32> to vector<16x8xf32>
    %5 = arith.addf %2, %4 : vector<16x8xf32>
    %c0_5 = arith.constant 0 : index
    %c0_6 = arith.constant 0 : index
    %6 = vector.load %arg4[%c0_5, %c0_6] : memref<16x8xf32, #tpu.memory_space<vmem>>, vector<16x8xf32>
    tpu.vector_store %arg4[%c0_5, %c0_6], %5 {strides = array<i32>} : memref<16x8xf32, #tpu.memory_space<vmem>>, vector<16x8xf32>,
    return
  }
  func.func @transform_0(%arg0: i32) -> (i32, i32) {
    %c0_i32 = arith.constant 0 : i32
    %c0_i32_0 = arith.constant 0 : i32
    return %arg0, %c0_i32 : i32, i32
  }
  func.func @transform_1(%arg0: i32) -> (i32, i32) {
    %c0_i32 = arith.constant 0 : i32
    %c0_i32_0 = arith.constant 0 : i32
    %c0_i32_1 = arith.constant 0 : i32
    return %c0_i32, %c0_i32_0 : i32, i32
  }
  func.func @transform_2(%arg0: i32) -> (i32, i32) {
    %c0_i32 = arith.constant 0 : i32
    %c0_i32_0 = arith.constant 0 : i32
    %c0_i32_1 = arith.constant 0 : i32
    return %c0_i32, %c0_i32_0 : i32, i32
  }
  func.func @transform_3(%arg0: i32) -> (i32, i32) {
    %c0_i32 = arith.constant 0 : i32
    %c0_i32_0 = arith.constant 0 : i32
    return %arg0, %c0_i32 : i32, i32
  }
}

</mosaic_0001>

<bundles_post_ra>
// kernel: tpu_custom_call.1
= control target key start
LH: loop header
LB: loop body
LE: loop exit
PB: predicated region body
PF: predicated region fallthrough
CT: control target
= control target key end

     0   :  { %vm27_vm0 = vcmask 261120   ;;  %vm109_vm1 = vcmask 64512   ;;  %s191_s1 = inlined_call_operand.vmem [shape: f32[32,8], index: 1, kind: input, shape index: {}]   ;;  %s192_s0 = inlined_call_operand.vmem [shape: f32[16,32], index: 0, kind: input, shape index: {}]   ;;  %s193_s2 = inlined_call_operand.vmem [shape: f32[1,8], index: 2, kind: input, shape index: {}]   ;;  %s194_s3 = inlined_call_operand.vmem [shape: f32[16,8], index: 3, kind: output, shape index: {}]  }
   0x1   :  { %v16_v0 = vld [vmem:[%s191_s1] sm:$0xff]  ;;  %v17_v1 = vld [vmem:[%s191_s1 + $0x8] sm:$0xff]  ;;  %v18_v2 = vld [vmem:[%s191_s1 + $0x10] sm:$0xff] }
   0x2   :  { %v136_v3 = vpack.c.bf16 %v17_v1, %v16_v0  ;;  %v19_v4 = vld [vmem:[%s191_s1 + $0x18] sm:$0xff]  ;;  %v14_v5 = vld [vmem:[%s192_s0] sm:$0xff]  ;;  %v15_v7 = vld [vmem:[%s192_s0 + $0x8] sm:$0xff] }
   0x3   :  { %v140_v6 = vpack.c.bf16 %v19_v4, %v18_v2  ;;  %133 = vmatprep.mubr.msk.f32.mxu0 %vm27_vm0, %v14_v5  ;;  %v116_v8 = vld [vmem:[%s193_s2] ss:$0 sm:$0xff] }
   0x4   :  { %137 = vmatprep.subr.bf16.mxu0 %v136_v3 }
   0x5   :  { %139 = vmatpush3.bf16.msra.mxu0 %v136_v3 }
   0x6   :  { %141 = vmatprep.subr.bf16.mxu0 %v140_v6 }
   0x9   :  { %143 = vmatpush3.bf16.msra.mxu0 %v140_v6 }
   0xc   :  { %134 = vmatmul.mubr.msk.f32.vlgmr.msra.gmra.mrb[0].mxu0 %vm27_vm0, %v15_v7 }
  0xdf   :  { %v135_v9 = vpop.f32.mrb[0].mxu0 }
  0xe0   :  { %v106_v10 = vadd.f32 %v135_v9, %v116_v8  ;;  %v100_v11 = vpop.f32.mrb[1].mxu0 }
  0xe1   :  { %v101_v12 = vadd.f32 %v116_v8, %v100_v11 }
  0xe2   :  { %111 = vst.msk [vmem:[%s194_s3 + $0x8] sm:$0xff] %vm109_vm1, %v106_v10 }
  0xe3   :  { %110 = vst.msk [vmem:[%s194_s3] sm:$0xff] %vm109_vm1, %v101_v12 }

</bundles_post_ra>
